<compile_context>
chip_gen: v5e
topology: v5e:2x2
jax: 0.10.0
libtpu: 0.0.40
codegen_flags: <defaults>
</compile_context>

<pallas_src>
import jax
import jax.numpy as jnp
from jax.experimental import pallas as pl
from jax.experimental.pallas import tpu as pltpu

_LANE = 128
_VMEM_TILE_BUDGET = 24 * 1024 * 1024     # tile-selection budget (v7x-safe)


def _autoencoder_kernel(x_ref, w1_ref, b1_ref, w2_ref, b2_ref, o_ref):
    # x arrives as f32; cast to the matmul dtype in-vreg (hidden under DMA).
    x = x_ref[...].astype(w1_ref.dtype)
    # encode: relu(x @ W1 + b1)      (bf16 MXU, f32 accumulate + f32 epilogue)
    h = jnp.dot(x, w1_ref[...], preferred_element_type=jnp.float32)
    h = jnp.maximum(h + b1_ref[...], 0.0)
    # decode: sigmoid(relu(h @ W2 + b2))
    y = jnp.dot(h.astype(w2_ref.dtype), w2_ref[...],
                preferred_element_type=jnp.float32)
    y = jnp.maximum(y + b2_ref[...], 0.0)
    # sigmoid(y) == 0.5*tanh(0.5*y) + 0.5  -> EUP slot instead of VALU divide.
    o_ref[...] = (0.5 * jnp.tanh(0.5 * y) + 0.5).astype(o_ref.dtype)


def _vmem_bytes(tm, d_in, h_pad, out_itemsize):
    """Approximate per-core VMEM footprint for a given batch tile."""
    x_tile = 2 * tm * d_in * 4               # f32 input tile, double-buffered
    o_tile = 2 * tm * d_in * out_itemsize    # output tile, double-buffered
    weights = 2 * d_in * h_pad * 2           # W1 + W2 (bf16), single-buffered
    biases = (h_pad + d_in) * 4
    interm = tm * (h_pad + d_in) * 4         # live f32 h / y intermediates
    return x_tile + o_tile + weights + biases + interm


def _pick_tm(batch, d_in, h_pad, out_itemsize, tm=None):
    """Largest multiple-of-16 divisor of B within the VMEM budget; capped at
    B//2 when B >= 32 (guarantees >= 2 grid steps for pipelining / megacore).
    Never returns a tile violating the (8,128) rule (falls back to tm = B)."""
    if tm is not None:
        assert batch % tm == 0, "tm must divide the batch size"
        assert tm % 8 == 0 or tm == batch, "tm must be a multiple of 8 or == B"
        return tm
    cap = batch // 2 if batch >= 32 else batch
    cap = min(cap, 1024)
    best_mult8 = None
    for t in range(cap, 0, -1):
        if batch % t:
            continue
        if t % 8 and t != batch:          # (8,128) rule: mult-of-8 or full dim
            continue
        if _vmem_bytes(t, d_in, h_pad, out_itemsize) > _VMEM_TILE_BUDGET:
            continue
        if t % 16 == 0:                   # bf16 sublane-dense tile
            return t
        if best_mult8 is None:
            best_mult8 = t
    return best_mult8 if best_mult8 is not None else batch


def prepare_autoencoder_params(w1, b1, w2, b2, *, compute_dtype=jnp.bfloat16):
    """One-time layout prep — call OUTSIDE the jitted forward.
    PyTorch nn.Linear layout in: w1 [H, D_in], b1 [H], w2 [D_in, H], b2 [D_in].
    Transposes to [in, out], casts weights to the matmul dtype, and zero-pads
    the hidden dim to a lane multiple (exact: relu(0+0)=0 padded activations
    hit zero rows of W2 and contribute nothing)."""
    h, d_in = w1.shape
    h_pad = -(-h // _LANE) * _LANE
    w1_t = jnp.asarray(w1, compute_dtype).T                 # [D_in, H]
    w2_t = jnp.asarray(w2, compute_dtype).T                 # [H, D_in]
    b1_r = jnp.asarray(b1, jnp.float32).reshape(1, h)
    b2_r = jnp.asarray(b2, jnp.float32).reshape(1, d_in)
    if h_pad != h:
        w1_t = jnp.pad(w1_t, ((0, 0), (0, h_pad - h)))
        w2_t = jnp.pad(w2_t, ((0, h_pad - h), (0, 0)))
        b1_r = jnp.pad(b1_r, ((0, 0), (0, h_pad - h)))
    return w1_t, b1_r, w2_t, b2_r


def autoencoder_forward(x, w1_t, b1_r, w2_t, b2_r, *, tm=None,
                        out_dtype=jnp.bfloat16):
    """x: [B, D_in] f32 (cast to bf16 inside the kernel).
    w1_t/b1_r/w2_t/b2_r: outputs of `prepare_autoencoder_params`."""
    B, D_in = x.shape
    D_in_w, H_pad = w1_t.shape
    assert D_in == D_in_w
    out_itemsize = jnp.dtype(out_dtype).itemsize
    tm = _pick_tm(B, D_in, H_pad, out_itemsize, tm)
    grid = (B // tm,)

    # Grid-invariant operands: constant index_map + single-buffered
    # (double-buffering never-reindexed tiles is pure VMEM waste).
    resident = dict(pipeline_mode=pl.Buffered(1))
    in_specs = [
        pl.BlockSpec((tm, D_in), lambda i: (i, 0)),                  # x tile
        pl.BlockSpec((D_in, H_pad), lambda i: (0, 0), **resident),   # W1
        pl.BlockSpec((1, H_pad), lambda i: (0, 0), **resident),      # b1
        pl.BlockSpec((H_pad, D_in), lambda i: (0, 0), **resident),   # W2
        pl.BlockSpec((1, D_in), lambda i: (0, 0), **resident),       # b2
    ]

    vmem_est = _vmem_bytes(tm, D_in, H_pad, out_itemsize)
    vmem_limit = int(min(max(2 * vmem_est, 32 * 1024 * 1024),
                         56 * 1024 * 1024))      # stays under v7x 64 MiB phys

    cost = pl.CostEstimate(
        flops=4 * B * D_in * H_pad,              # two matmuls
        transcendentals=B * D_in,                # tanh-based sigmoid
        bytes_accessed=(B * D_in * 4             # x (f32, read once)
                        + 2 * D_in * H_pad * 2   # W1 + W2 (bf16)
                        + (H_pad + D_in) * 4     # biases (f32)
                        + B * D_in * out_itemsize))   # output

    return pl.pallas_call(
        _autoencoder_kernel,
        out_shape=jax.ShapeDtypeStruct((B, D_in), out_dtype),
        grid_spec=pltpu.PrefetchScalarGridSpec(
            num_scalar_prefetch=0,
            grid=grid,
            in_specs=in_specs,
            out_specs=pl.BlockSpec((tm, D_in), lambda i: (i, 0)),
        ),
        compiler_params=pltpu.CompilerParams(
            dimension_semantics=("parallel",),   # batch axis -> megacore
            vmem_limit_bytes=vmem_limit,
        ),
        cost_estimate=cost,
    )(x, w1_t, b1_r, w2_t, b2_r)


def _reference_forward(x, w1, b1, w2, b2):
    h = jnp.maximum(x @ w1.T + b1, 0.0)
    y = jnp.maximum(h @ w2.T + b2, 0.0)
    return jax.nn.sigmoid(y)


if __name__ == "__main__":
    input_num = 128
    hidden_num = 32
    batch = 64     # -> tm=32, grid=(2,): >=2 steps for pipelining / 2 TCs

    key = jax.random.PRNGKey(0)
    kx, k1, k2, k3, k4 = jax.random.split(key, 5)

    # Deterministic init mimicking PyTorch nn.Linear uniform(-1/sqrt(in), 1/sqrt(in)).
    bound1 = 1.0 / jnp.sqrt(float(input_num))
    bound2 = 1.0 / jnp.sqrt(float(hidden_num))
    w1 = jax.random.uniform(k1, (hidden_num, input_num), jnp.float32, -bound1, bound1)
    b1 = jax.random.uniform(k2, (hidden_num,), jnp.float32, -bound1, bound1)
    w2 = jax.random.uniform(k3, (input_num, hidden_num), jnp.float32, -bound2, bound2)
    b2 = jax.random.uniform(k4, (input_num,), jnp.float32, -bound2, bound2)

    x = jax.random.normal(kx, (batch, input_num), jnp.float32)

    # One-time layout prep (transpose / bf16 cast / lane-pad) outside the jit.
    params = prepare_autoencoder_params(w1, b1, w2, b2)

    fwd = jax.jit(autoencoder_forward)
    out = jax.block_until_ready(fwd(x, *params))

    ref = _reference_forward(x, w1, b1, w2, b2)
    assert out.shape == (batch, input_num)
    assert out.dtype == jnp.bfloat16
    err = float(jnp.max(jnp.abs(out.astype(jnp.float32) - ref)))
    # bf16 matmul operands + bf16 output -> relaxed tolerance vs f32 reference.
    assert err < 2e-2, err

    print("KERNEL_OK")
</pallas_src>

<mosaic_0001>
module attributes {stable_mosaic.version = 11 : i64} {
  func.func @_autoencoder_kernel(%arg0: i32, %arg1: memref<32x128xf32, #tpu.memory_space<vmem>>, %arg2: memref<128x128xbf16, #tpu.memory_space<vmem>>, %arg3: memref<1x128xf32, #tpu.memory_space<vmem>>, %arg4: memref<128x128xbf16, #tpu.memory_space<vmem>>, %arg5: memref<1x128xf32, #tpu.memory_space<vmem>>, %arg6: memref<32x128xbf16, #tpu.memory_space<vmem>>) attributes {dimension_semantics = [#tpu.dimension_semantics<parallel>], iteration_bounds = array<i64: 2>, scalar_prefetch = 0 : i64, scratch_operands = 0 : i64, tpu.core_type = #tpu.core_type<tc>, window_params = [{transform_indices = @transform_0, window_bounds = array<i64: 32, 128>}, {pipeline_mode = #tpu.pipeline_mode<synchronous>, transform_indices = @transform_1, window_bounds = array<i64: 128, 128>}, {pipeline_mode = #tpu.pipeline_mode<synchronous>, transform_indices = @transform_2, window_bounds = array<i64: 1, 128>}, {pipeline_mode = #tpu.pipeline_mode<synchronous>, transform_indices = @transform_3, window_bounds = array<i64: 128, 128>}, {pipeline_mode = #tpu.pipeline_mode<synchronous>, transform_indices = @transform_4, window_bounds = array<i64: 1, 128>}, {transform_indices = @transform_5, window_bounds = array<i64: 32, 128>}]} {
    %c0 = arith.constant 0 : index
    %c0_0 = arith.constant 0 : index
    %0 = vector.load %arg1[%c0, %c0_0] : memref<32x128xf32, #tpu.memory_space<vmem>>, vector<32x128xf32>
    %1 = arith.truncf %0 : vector<32x128xf32> to vector<32x128xbf16>
    %c0_1 = arith.constant 0 : index
    %c0_2 = arith.constant 0 : index
    %2 = vector.load %arg2[%c0_1, %c0_2] : memref<128x128xbf16, #tpu.memory_space<vmem>>, vector<128x128xbf16>
    %cst = arith.constant dense<0.000000e+00> : vector<32x128xf32>
    %3 = tpu.matmul %1, %2, %cst {dimension_numbers = #tpu.dot_dimension_numbers<[1], [0], [0], [1], [0, 0, 1, 1], [], []>} : vector<32x128xbf16>, vector<128x128xbf16>, vector<32x128xf32> -> vector<32x128xf32>
    %c0_3 = arith.constant 0 : index
    %c0_4 = arith.constant 0 : index
    %4 = vector.load %arg3[%c0_3, %c0_4] : memref<1x128xf32, #tpu.memory_space<vmem>>, vector<1x128xf32>
    %5 = vector.broadcast %4 : vector<1x128xf32> to vector<32x128xf32>
    %6 = arith.addf %3, %5 : vector<32x128xf32>
    %cst_5 = arith.constant 0.000000e+00 : f32
    %7 = vector.broadcast %cst_5 : f32 to vector<32x128xf32>
    %8 = arith.maximumf %6, %7 : vector<32x128xf32>
    %9 = arith.truncf %8 : vector<32x128xf32> to vector<32x128xbf16>
    %c0_6 = arith.constant 0 : index
    %c0_7 = arith.constant 0 : index
    %10 = vector.load %arg4[%c0_6, %c0_7] : memref<128x128xbf16, #tpu.memory_space<vmem>>, vector<128x128xbf16>
    %cst_8 = arith.constant dense<0.000000e+00> : vector<32x128xf32>
    %11 = tpu.matmul %9, %10, %cst_8 {dimension_numbers = #tpu.dot_dimension_numbers<[1], [0], [0], [1], [0, 0, 1, 1], [], []>} : vector<32x128xbf16>, vector<128x128xbf16>, vector<32x128xf32> -> vector<32x128xf32>
    %c0_9 = arith.constant 0 : index
    %c0_10 = arith.constant 0 : index
    %12 = vector.load %arg5[%c0_9, %c0_10] : memref<1x128xf32, #tpu.memory_space<vmem>>, vector<1x128xf32>
    %13 = vector.broadcast %12 : vector<1x128xf32> to vector<32x128xf32>
    %14 = arith.addf %11, %13 : vector<32x128xf32>
    %cst_11 = arith.constant 0.000000e+00 : f32
    %15 = vector.broadcast %cst_11 : f32 to vector<32x128xf32>
    %16 = arith.maximumf %14, %15 : vector<32x128xf32>
    %cst_12 = arith.constant 5.000000e-01 : f32
    %17 = vector.broadcast %cst_12 : f32 to vector<32x128xf32>
    %18 = arith.mulf %17, %16 : vector<32x128xf32>
    %19 = math.tanh %18 : vector<32x128xf32>
    %cst_13 = arith.constant 5.000000e-01 : f32
    %20 = vector.broadcast %cst_13 : f32 to vector<32x128xf32>
    %21 = arith.mulf %20, %19 : vector<32x128xf32>
    %cst_14 = arith.constant 5.000000e-01 : f32
    %22 = vector.broadcast %cst_14 : f32 to vector<32x128xf32>
    %23 = arith.addf %21, %22 : vector<32x128xf32>
    %24 = arith.truncf %23 : vector<32x128xf32> to vector<32x128xbf16>
    %c0_15 = arith.constant 0 : index
    %c0_16 = arith.constant 0 : index
    %25 = vector.load %arg6[%c0_15, %c0_16] : memref<32x128xbf16, #tpu.memory_space<vmem>>, vector<32x128xbf16>
    tpu.vector_store %arg6[%c0_15, %c0_16], %24 {strides = array<i32>} : memref<32x128xbf16, #tpu.memory_space<vmem>>, vector<32x128xbf16>,
    return
  }
  func.func @transform_0(%arg0: i32) -> (i32, i32) {
    %c0_i32 = arith.constant 0 : i32
    %c0_i32_0 = arith.constant 0 : i32
    return %arg0, %c0_i32 : i32, i32
  }
  func.func @transform_1(%arg0: i32) -> (i32, i32) {
    %c0_i32 = arith.constant 0 : i32
    %c0_i32_0 = arith.constant 0 : i32
    %c0_i32_1 = arith.constant 0 : i32
    return %c0_i32, %c0_i32_0 : i32, i32
  }
  func.func @transform_2(%arg0: i32) -> (i32, i32) {
    %c0_i32 = arith.constant 0 : i32
    %c0_i32_0 = arith.constant 0 : i32
    %c0_i32_1 = arith.constant 0 : i32
    return %c0_i32, %c0_i32_0 : i32, i32
  }
  func.func @transform_3(%arg0: i32) -> (i32, i32) {
    %c0_i32 = arith.constant 0 : i32
    %c0_i32_0 = arith.constant 0 : i32
    %c0_i32_1 = arith.constant 0 : i32
    return %c0_i32, %c0_i32_0 : i32, i32
  }
  func.func @transform_4(%arg0: i32) -> (i32, i32) {
    %c0_i32 = arith.constant 0 : i32
    %c0_i32_0 = arith.constant 0 : i32
    %c0_i32_1 = arith.constant 0 : i32
    return %c0_i32, %c0_i32_0 : i32, i32
  }
  func.func @transform_5(%arg0: i32) -> (i32, i32) {
    %c0_i32 = arith.constant 0 : i32
    %c0_i32_0 = arith.constant 0 : i32
    return %arg0, %c0_i32 : i32, i32
  }
}

</mosaic_0001>

<bundles_post_ra>
// kernel: autoencoder_forward.1
= control target key start
LH: loop header
LB: loop body
LE: loop exit
PB: predicated region body
PF: predicated region fallthrough
CT: control target
= control target key end

     0   :  { %10 = vsyncpa [#allocation3], 0  ;;  %s1166_s0 = inlined_call_operand.hbm [shape: f32[64,128], index: 0, kind: input, shape index: {}]   ;;  %s1167_s1 = inlined_call_operand.hbm [shape: bf16[128,128], index: 1, kind: input, shape index: {}]   ;;  %s1168_s2 = inlined_call_operand.vmem [shape: f32[1,128], index: 2, kind: input, shape index: {}]   ;;  %s1169_s3 = inlined_call_operand.hbm [shape: bf16[128,128], index: 3, kind: input, shape index: {}]   ;;  %s1170_s4 = inlined_call_operand.vmem [shape: f32[1,128], index: 4, kind: input, shape index: {}]   ;;  %s1171_s5 = inlined_call_operand.hbm [shape: bf16[64,128], index: 5, kind: output, shape index: {}]  }
   0x1   :  { %12 = vsyncpa [#allocation3 + $0x1], 0 }
   0x2   :  { %13 = vsyncpa [#allocation6], 0 }
   0x3   :  { %14 = vsyncpa [#allocation4], 0 }
   0x4   :  { %16 = vsyncpa [#allocation4 + $0x1], 0  ;;  %s1012_s18 = smov 0   ;;  %s1014_s19 = smov 0  }
   0x5   :  { %s1016_s20 = smov 0   ;;  %s1018_s21 = smov 0  }
   0x6 LB: > { %s1033_s22 = sadd.s32 4294967295, %s972_s21   ;;  %s602_s23 = sadd.s32 4294967294, %s972_s21   ;;  %s972_s21 = sphi %s1018_s21, %s1181_s21   ;;  %s968_s20 = sphi %s1016_s20, %s1180_s20   ;;  %s964_s19 = sphi %s1014_s19, %s1179_s19   ;;  %s960_s18 = sphi %s1012_s18, %s1178_s18  }
   0x7   : > { %p42_p0 = scmp.ne.s32.totalorder %s964_s19, %s960_s18  ;;  %p43_p1 = scmp.eq.s32.totalorder %s1033_s22, 0 }
   0x8   : > { %p150_p2 = scmp.eq.s32.totalorder %s1033_s22, 1  ;;  %p156_p3 = scmp.eq.s32.totalorder %s602_s23, 1 }
   0x9   : > { %p1042_p4 = por %p43_p1, %p42_p0  ;;  %p603_p5 = scmp.ge.s32.totalorder %s972_s21, 1 }
   0xa   : > { %p1047_p6 = por %p156_p3, %p42_p0  ;;  %p163_p7 = scmp.lt.s32.totalorder %s972_s21, 3 }
   0xb   : > { %s174_s28 = sshll.u32 %s1167_s1, 4  ;;  %s974_s30 = smov [#allocation5]   ;;  %s175_s28 = int_to_ptr.hbm [resolvable:$true] %s174_s28 }
   0xc   : > { %p1055_p8 = pnand %p603_p5, %p163_p7  ;;  %s176_s6 = sshll.u32 %s974_s30, 4  ;;  %s177_s6 = int_to_ptr.vmem [resolvable:$true] %s176_s6 }
   0xd   : > { %s191_s9 = sshll.u32 %s1169_s3, 4  ;;  %s975_s10 = smov 64   ;;  %s192_s9 = int_to_ptr.hbm [resolvable:$true] %s191_s9 }
   0xe   : > { %p741_p9 = pneg %p1055_p8  ;;  %s976_s11 = smov 4  }
   0xf   : > { %s977_s12 = smov [#allocation7]   ;;  %s1068_s14 = sadd.s32 1, %s972_s21  }
  0x10   : > { %p742_p10 = pnand %p741_p9, %p43_p1  ;;  %s193_s13 = sshll.u32 %s977_s12, 4  ;;  %s194_s13 = int_to_ptr.vmem [resolvable:$true] %s193_s13 }
  0x11   : > { %s29_s15 = sadd.s32 1, %s968_s20  ;;  %s26_s16 = ssub.s32 %s972_s21, %s1068_s14 }
  0x12   : > { %744 = dma.hbm_to_vmem [thread:$0]  (!%p742_p10), %s175_s28, 1024, %s177_s6, [#allocation6], %s975_s10, %s975_s10, %s976_s11  }
  0x13   : > { %747 = dma.hbm_to_vmem [thread:$0]  (!%p742_p10), %s192_s9, 1024, %s194_s13, [#allocation6], %s975_s10, %s975_s10, %s976_s11  }
  0x14   : > { %p36_p12 = scmp.ne.s32.totalorder %s968_s20, %s964_s19  ;;  %p27_p13 = scmp.eq.s32.totalorder %s26_s16, 0 }
  0x15   : > { %p37_p0 = scmp.eq.s32.totalorder %s972_s21, 0  ;;  %p758_p5 = scmp.lt.s32.totalorder %s972_s21, 2 }
  0x16   : > { %p1078_p3 = por %p150_p2, %p36_p12  ;;  %s210_s26 = sand.u32 1, %s968_s20  }
  0x17   : > { %s1084_s23 = scalar_select %p27_p13, %s968_s20, %s29_s15  }
  0x18   : > { %p38_p7 = por %p37_p0, %p36_p12  ;;  %s607_s27 = sshll.u32 %s210_s26, 5 }
  0x19   : > { %s684_s28 = sshll.u32 %s972_s21, 5  ;;  %s214_s8 = scalar_lea.vmem [#allocation2], %s607_s27 }
  0x1a   : > { %s219_s7 = scalar_lea.hbm %s1166_s0, %s684_s28  ;;  %s222_s9 = sshll.u32 %s214_s8, 4  ;;  %s223_s9 = int_to_ptr.vmem [resolvable:$true] %s222_s9 }
  0x1b   : > { %s220_s10 = sshll.u32 %s219_s7, 4  ;;  %p1091_p2 = pnand %p758_p5, %p38_p7  ;;  %s221_s10 = int_to_ptr.hbm [resolvable:$true] %s220_s10 }
  0x1c   : > { %s211_s12 = scalar_lea.sflag [#allocation3], %s210_s26  ;;  %s872_s13 = sshra.s32 %s221_s10, 4  ;;  %s873_s13 = int_to_ptr.hbm [resolvable:$true] %s872_s13 }
  0x1d   : > { %s874_s15 = scalar_lea.hbm %s873_s13, 32  ;;  %p876_p10 = pneg %p1091_p2 }
  0x1e   : > { %p875_p9 = scmp.ne.s32.totalorder %s873_s13, %s874_s15  ;;  %s879_s28 = scalar_lea.hbm %s1166_s0, 64 }
  0x1f   : > { %p880_p0 = scmp.lt.s32.totalorder %s873_s13, %s1166_s0  ;;  %p881_p5 = scmp.lt.s32.totalorder %s879_s28, %s874_s15 }
  0x20   : > { %p877_p12 = pnand %p876_p10, %p875_p9 }
  0x21   : > { %p882_p7 = por %p881_p5, %p880_p0 }
  0x22   : > { %p878_p13 = pneg %p877_p12 }
  0x24   : > { %p883_p11 = pnand %p882_p7, %p878_p13 }
  0x26   : > { %886 = shalt.err (!%p883_p11)
}
  0x27   : > { %s978_s26 = smov 128   ;;  %s979_s7 = smov 8  }
  0x28   : > { %751 = dma.hbm_to_vmem [thread:$0]  (!%p1091_p2), %s221_s10, 512, %s223_s9, %s211_s12, %s978_s26, %s978_s26, %s979_s7  }
  0x29   : > { %234 = sbr.rel (%p1055_p8) target bundleno = 390 (0x186), region = 40  ;;  %s1108_s8 = sand.u32 (!%p1055_p8), 1, %s964_s19  }
  0x2a   : > { %s611_s16 = sshll.u32 (!%p1055_p8), %s1108_s8, 5  ;;  %s237_s13 = scalar_lea.sflag (!%p1055_p8), [#allocation3], %s1108_s8 }
  0x2b   : > { %s1112_s15 = scalar_lea.vmem (!%p1055_p8), [#allocation2], %s611_s16 }
  0x2e   : > { %947 = dma.done.wait (%p1042_p4), %s237_s13, 512  }
  0x2f   : > { %949 = vsyncadd (%p1042_p4), %s237_s13, 4294966784 }
  0x30   : > { %951 = dma.done.wait (%p43_p1), [#allocation6], 2048  }
  0x31   : > { %953 = vsyncadd (%p43_p1), [#allocation6], 4294965248  ;;  %v692_v0 = vld [vmem:[#allocation5 + $0x38] sm:$0xff]  ;;  %v691_v1 = vld [vmem:[#allocation5 + $0x30] sm:$0xff]  ;;  %s614_s11 = sshll.u32 %s1108_s8, 4  ;;  %s701_s27 = sshll.u32 %s1033_s22, 4 }
  0x32   : > { %354 = vmatpush.bf16.msra.mxu0 %v692_v0  ;;  %713 = vmatpush.bf16.msra.mxu2 %v692_v0  ;;  %v700_v2 = vld [vmem:[#allocation7 + $0x38] sm:$0xff]  ;;  %v690_v3 = vld [vmem:[#allocation5 + $0x28] sm:$0xff]  ;;  %v699_v4 = vld [vmem:[#allocation7 + $0x30] sm:$0xff]  ;;  %s277_s12 = scalar_lea.vmem [#allocation8], %s614_s11  ;;  %s506_s6 = scalar_lea.hbm %s1171_s5, %s701_s27 }
  0x33   : > { %447 = vmatpush.bf16.msra.mxu1 %v700_v2  ;;  %721 = vmatpush.bf16.msra.mxu3 %v700_v2  ;;  %v689_v5 = vld [vmem:[#allocation5 + $0x20] sm:$0xff]  ;;  %v698_v6 = vld [vmem:[#allocation7 + $0x28] sm:$0xff]  ;;  %v688_v7 = vld [vmem:[#allocation5 + $0x18] sm:$0xff]  ;;  %s507_s26 = sshll.u32 %s277_s12, 4  ;;  %s509_s7 = sshll.u32 %s506_s6, 4  ;;  %s508_s26 = int_to_ptr.vmem [resolvable:$true] %s507_s26  ;;  %s510_s7 = int_to_ptr.hbm [resolvable:$true] %s509_s7 }
  0x34   : > { %v697_v8 = vld [vmem:[#allocation7 + $0x20] sm:$0xff]  ;;  %v687_v9 = vld [vmem:[#allocation5 + $0x10] sm:$0xff]  ;;  %v686_v10 = vld [vmem:[#allocation5 + $0x8] sm:$0xff]  ;;  %s495_s16 = scalar_lea.sflag [#allocation4], %s1108_s8  ;;  %s916_s13 = sshra.s32 %s510_s7, 4  ;;  %s917_s13 = int_to_ptr.hbm [resolvable:$true] %s916_s13 }
  0x35   : > { %v685_v11 = vld [vmem:[#allocation5] sm:$0xff]  ;;  %v281_v13 = vld [vmem:[%s1112_s15 + $0x8] sm:$0xff]  ;;  %v282_v14 = vld [vmem:[%s1112_s15 + $0x10] sm:$0xff]  ;;  %s918_s22 = scalar_lea.hbm %s917_s13, 16  ;;  %s922_s29 = scalar_lea.hbm %s1171_s5, 32 }
  0x36   : > { %355 = vmatpush.bf16.msra.mxu0 %v691_v1  ;;  %714 = vmatpush.bf16.msra.mxu2 %v691_v1  ;;  %v280_v12 = vld [vmem:[%s1112_s15] sm:$0xff]  ;;  %v283_v15 = vld [vmem:[%s1112_s15 + $0x18] sm:$0xff]  ;;  %v695_v19 = vld [vmem:[#allocation7 + $0x10] sm:$0xff]  ;;  %p919_p1 = scmp.ne.s32.totalorder %s917_s13, %s918_s22  ;;  %p923_p11 = scmp.lt.s32.totalorder %s917_s13, %s1171_s5 }
  0x37   : > { %448 = vmatpush.bf16.msra.mxu1 %v699_v4  ;;  %722 = vmatpush.bf16.msra.mxu3 %v699_v4  ;;  %v284_v16 = vpack.c.bf16 %v281_v13, %v280_v12  ;;  %v285_v17 = vpack.c.bf16 %v283_v15, %v282_v14  ;;  %v696_v18 = vld [vmem:[#allocation7 + $0x18] sm:$0xff]  ;;  %v694_v20 = vld [vmem:[#allocation7 + $0x8] sm:$0xff]  ;;  %v693_v21 = vld [vmem:[#allocation7] sm:$0xff]  ;;  %p924_p2 = scmp.lt.s32.totalorder %s922_s29, %s918_s22 }
  0x38   : > { %v802_v23 = vld [vmem:[%s1168_s2] ss:$0 sm:$0xff]  ;;  %p920_p4 = pnand %p919_p1, %p1078_p3 }
  0x39   : > { %v803_v37 = vld [vmem:[%s1170_s4] ss:$0 sm:$0xff]  ;;  %p925_p9 = por %p924_p2, %p923_p11 }
  0x3a   : > { %356 = vmatpush.bf16.msra.mxu0 %v690_v3  ;;  %715 = vmatpush.bf16.msra.mxu2 %v690_v3  ;;  %p921_p8 = pneg %p920_p4 }
  0x3b   : > { %449 = vmatpush.bf16.msra.mxu1 %v698_v6  ;;  %723 = vmatpush.bf16.msra.mxu3 %v698_v6 }
  0x3c   : > { %p926_p10 = pnand %p925_p9, %p921_p8 }
  0x3e   : > { %357 = vmatpush.bf16.msra.mxu0 %v689_v5  ;;  %716 = vmatpush.bf16.msra.mxu2 %v689_v5 }
  0x3f   : > { %450 = vmatpush.bf16.msra.mxu1 %v697_v8  ;;  %724 = vmatpush.bf16.msra.mxu3 %v697_v8 }
  0x42   : > { %358 = vmatpush.bf16.msra.mxu0 %v688_v7  ;;  %717 = vmatpush.bf16.msra.mxu2 %v688_v7 }
  0x43   : > { %451 = vmatpush.bf16.msra.mxu1 %v696_v18  ;;  %725 = vmatpush.bf16.msra.mxu3 %v696_v18 }
  0x46   : > { %359 = vmatpush.bf16.msra.mxu0 %v687_v9  ;;  %718 = vmatpush.bf16.msra.mxu2 %v687_v9 }
  0x47   : > { %452 = vmatpush.bf16.msra.mxu1 %v695_v19  ;;  %726 = vmatpush.bf16.msra.mxu3 %v695_v19 }
  0x4a   : > { %360 = vmatpush.bf16.msra.mxu0 %v686_v10  ;;  %719 = vmatpush.bf16.msra.mxu2 %v686_v10 }
  0x4b   : > { %453 = vmatpush.bf16.msra.mxu1 %v694_v20  ;;  %727 = vmatpush.bf16.msra.mxu3 %v694_v20 }
  0x4e   : > { %361 = vmatpush.bf16.msra.mxu0 %v685_v11  ;;  %720 = vmatpush.bf16.msra.mxu2 %v685_v11 }
  0x4f   : > { %454 = vmatpush.bf16.msra.mxu1 %v693_v21  ;;  %728 = vmatpush.bf16.msra.mxu3 %v693_v21 }
  0x51   : > { %362 = vmatmul.bf16.vlgmr.msra.gmra.mxu0 %v284_v16  ;;  %367 = vmatmul.bf16.vlgmr.msra.gmra.mxu2 %v285_v17 }
  0xce   : > { %v363_v22 = vpop.f32.mrf.mxu0 }
  0xcf   : > { %v364_v24 = vadd.f32 %v802_v23, %v363_v22 }
  0xd1   : > { %v373_v27 = vmax.f32 %v364_v24, 0.0 }
  0xd4   : > { %v368_v25 = vpop.f32.mrf.mxu2 }
  0xd5   : > { %v369_v30 = vadd.f32 %v802_v23, %v368_v25 }
  0xd6   : > { %v365_v26 = vpop.f32.mrf.mxu0 }
  0xd7   : > { %v366_v28 = vadd.f32 %v802_v23, %v365_v26  ;;  %v375_v34 = vmax.f32 %v369_v30, 0.0 }
  0xd9   : > { %v374_v29 = vmax.f32 %v366_v28, 0.0 }
  0xdb   : > { %v377_v31 = vpack.c.bf16 %v374_v29, %v373_v27 }
  0xdc   : > { %v370_v32 = vpop.f32.mrf.mxu2 }
  0xdd   : > { %v371_v33 = vadd.f32 %v802_v23, %v370_v32  ;;  %455 = vmatmul.bf16.vlgmr.msra.gmra.mxu1 %v377_v31 }
  0xdf   : > { %v376_v35 = vmax.f32 %v371_v33, 0.0 }
  0xe1   : > { %v378_v36 = vpack.c.bf16 %v376_v35, %v375_v34 }
  0xe3   : > { %460 = vmatmul.bf16.vlgmr.msra.gmra.mxu3 %v378_v36 }
 0x15a   : > { %v456_v38 = vpop.f32.mrf.mxu1 }
 0x15b   : > { %v457_v39 = vadd.f32 %v803_v37, %v456_v38 }
 0x15d   : > { %v466_v40 = vmax.f32 %v457_v39, 0.0 }
 0x15f   : > { %v470_v41 = vmul.f32 0.5, %v466_v40 }
 0x161   : > { %804 = vtanh.f32 %v470_v41 }
 0x162   : > { %v458_v42 = vpop.f32.mrf.mxu1 }
 0x163   : > { %v459_v43 = vadd.f32 %v803_v37, %v458_v42 }
 0x165   : > { %v467_v44 = vmax.f32 %v459_v43, 0.0 }
 0x166   : > { %v461_v45 = vpop.f32.mrf.mxu3 }
 0x167   : > { %v471_v46 = vmul.f32 0.5, %v467_v44  ;;  %v462_v47 = vadd.f32 %v803_v37, %v461_v45  ;;  %v805_v49 = vpop.eup %804 }
 0x168   : > { %v478_v51 = vmul.f32 0.5, %v805_v49 }
 0x169   : > { %806 = vtanh.f32 %v471_v46  ;;  %v468_v48 = vmax.f32 %v462_v47, 0.0 }
 0x16a   : > { %v482_v57 = vadd.f32 0.5, %v478_v51 }
 0x16b   : > { %v472_v50 = vmul.f32 0.5, %v468_v48 }
 0x16d   : > { %808 = vtanh.f32 %v472_v50 }
 0x16e   : > { %v463_v52 = vpop.f32.mrf.mxu3 }
 0x16f   : > { %v807_v53 = vpop.eup %806  ;;  %v464_v54 = vadd.f32 %v803_v37, %v463_v52 }
 0x170   : > { %v479_v55 = vmul.f32 0.5, %v807_v53 }
 0x171   : > { %v469_v56 = vmax.f32 %v464_v54, 0.0 }
 0x172   : > { %v483_v58 = vadd.f32 0.5, %v479_v55 }
 0x173   : > { %v473_v59 = vmul.f32 0.5, %v469_v56  ;;  %v809_v61 = vpop.eup %808 }
 0x174   : > { %v705_v60 = vpack.c.bf16 %v483_v58, %v482_v57  ;;  %v480_v62 = vmul.f32 0.5, %v809_v61 }
 0x175   : > { %810 = vtanh.f32 %v473_v59 }
 0x176   : > { %706 = vst [vmem:[%s277_s12] sm:$0xff] %v705_v60   ;;  %v484_v1 = vadd.f32 0.5, %v480_v62 }
 0x17b   : > { %v811_v63 = vpop.eup %810 }
 0x17c   : > { %v481_v0 = vmul.f32 0.5, %v811_v63 }
 0x17e   : > { %v485_v2 = vadd.f32 0.5, %v481_v0 }
 0x180   : > { %v710_v3 = vpack.c.bf16 %v485_v2, %v484_v1 }
 0x182   : > { %712 = vst [vmem:[%s277_s12 + $0x8] sm:$0xff] %v710_v3  }
 0x183   : > { %929 = shalt.err (!%p926_p10)
}
 0x184   : > { %s980_s8 = smov 64   ;;  %s981_s11 = smov 4  }
 0x185   : > { %739 = dma.vmem_to_hbm [thread:$0]  (%p1078_p3), %s508_s26, 256, %s510_s7, %s495_s16, %s980_s8, %s980_s8, %s981_s11  }
 0x186 PF: > { %s524_s12 = sand.u32 1, %s960_s18   ;;  %p1177_p12 = scmp.ge.s32.totalorder %s972_s21, 2 }
 0x187   : > { %s525_s27 = scalar_lea.sflag [#allocation4], %s524_s12 }
 0x188   : > { %p753_p13 = pnand %p1177_p12, %p1047_p6 }
 0x18a   : > { %p754_p0 = pneg %p753_p13 }
 0x18c   : > { %955 = dma.done.wait (%p754_p0), %s525_s27, 256  }
 0x18d   : > { %957 = vsyncadd (%p754_p0), %s525_s27, 4294967040  ;;  %p19_p5 = scmp.ge.s32.totalorder %s1068_s14, 4   ;;  %s1178_s18 = smov %s964_s19 }
 0x18e   : > { %s1179_s19 = smov %s968_s20  ;;  %s1180_s20 = smov %s1084_s23 }
 0x18f   : > { %s1181_s21 = smov %s1068_s14  ;;  %21 = sbr.rel (!%p19_p5) target bundleno = 6 (0x6), region = 93 }
 0x194   :  { %531 = vsyncpa [#allocation3], 1 }
 0x195   :  { %533 = vsyncpa [#allocation3 + $0x1], 1 }
 0x196   :  { %534 = vsyncpa [#allocation6], 1 }
 0x197   :  { %535 = vsyncpa [#allocation4], 1 }
 0x198   :  { %537 = vsyncpa [#allocation4 + $0x1], 1 }

</bundles_post_ra>
